<compile_context>
chip_gen: v6e
topology: v6e:2x2x1
jax: 0.10.0
libtpu: 0.0.40
codegen_flags: <defaults>
</compile_context>

<pallas_src>
import functools

import jax
import jax.numpy as jnp
from jax.experimental import pallas as pl
from jax.experimental.pallas import tpu as pltpu


def _pick_tile_hw(hw, n_emb, emb_dim, vmem_budget_bytes=16 * 1024 * 1024):
    """Largest HW tile that keeps the per-step working set under a v7x-safe
    VMEM budget, is a multiple of 128 (or the whole row), and divides hw."""
    # Rough per-HW-column f32 bytes: ~5 live (K,T) temporaries (cross/d/iota/
    # one-hot + slack), (D,T) z/zq in f32, and double-buffered z/zq/idx blocks.
    bytes_per_col = 4 * (5 * n_emb + 6 * emb_dim + 4)
    cap = vmem_budget_bytes // max(bytes_per_col, 1)
    cap = max(128, min(8192, (cap // 128) * 128))
    if hw <= cap:
        return hw
    t = cap
    while t >= 128:
        if hw % t == 0:
            return t
        t -= 128
    return hw  # no lane-aligned divisor; fall back to one tile per row


def _vq_kernel(z_ref, en2_ref, et_ref, esq_ref,
               zq_ref, idx_ref, sqerr_ref, counts_ref):
    t = pl.program_id(2)

    # Per-(batch, hw-split) resident accumulators: init on the first HW tile.
    @pl.when(t == 0)
    def _():
        sqerr_ref[...] = jnp.zeros_like(sqerr_ref)
        counts_ref[...] = jnp.zeros_like(counts_ref)

    z = z_ref[0].astype(jnp.float32)      # (D, T)  lanes = HW tile
    e_n2 = en2_ref[...]                   # (K, D)  hoisted -2 * emb
    e_t = et_ref[...]                     # (D, K)  hoisted transpose
    e_sq = esq_ref[...]                   # (K, 1)  hoisted ||e||^2
    k = e_n2.shape[0]

    # Argmin objective: ||z - e_k||^2 minus the per-column constant ||z||^2,
    # i.e. d[k, t] = -2 e_k . z_t + ||e_k||^2.  DEFAULT matmul precision:
    # only the ordering matters here (near-tie flips are tolerated).
    cross = jnp.dot(e_n2, z, preferred_element_type=jnp.float32)      # (K, T)
    d = cross + e_sq                                                  # (K, T)

    # First-minimum argmin along the codebook axis (torch.argmin tie rule),
    # keeping a strictly one-hot selection for the gather.
    min_d = jnp.min(d, axis=0, keepdims=True)                         # (1, T)
    ids = jax.lax.broadcasted_iota(jnp.int32, d.shape, 0)             # (K, T)
    idx = jnp.min(jnp.where(d == min_d, ids, k), axis=0, keepdims=True)  # (1,T)
    onehot = (ids == idx).astype(jnp.float32)                         # (K, T)

    # Codebook gather: HIGHEST so f32 codebook rows pass through exactly
    # (operands are exact 0/1 so no cancellation).
    zq = jnp.dot(e_t, onehot, preferred_element_type=jnp.float32,
                 precision=jax.lax.Precision.HIGHEST)                 # (D, T)

    # Lane-dense stores (last dim = HW tile, multiple of 128 or full row).
    zq_ref[0] = zq.astype(zq_ref.dtype)
    idx_ref[0] = idx

    # Exact squared error (cheap at small D; avoids cancellation of the
    # expanded-distance form).
    diff = zq - z
    sqerr_ref[...] += jnp.sum(diff * diff).reshape(1, 1, 1)
    counts_ref[...] += jnp.sum(onehot, axis=1, keepdims=True).reshape(1, k, 1)


@functools.partial(jax.jit, static_argnames=("beta", "tile_hw", "hw_splits"))
def vector_quantizer_forward(z_nchw, emb, *, beta=0.25, tile_hw=None,
                             hw_splits=None):
    """Forward pass of VectorQuantizer.

    z_nchw: (B, C, H, W) with C == emb_dim   (same as the PyTorch module input)
    emb:    (n_emb, emb_dim) codebook
    Returns (zq_nchw, loss, perplexity, nearest_onehot, nearest_idx).
    """
    B, C, H, W = z_nchw.shape
    K, D = emb.shape
    assert C == D, "channel dim must equal emb_dim"
    HW = H * W
    N = B * HW

    if tile_hw is None:
        tile_hw = _pick_tile_hw(HW, K, D)
    assert HW % tile_hw == 0, "H*W must be divisible by tile_hw"
    num_tiles = HW // tile_hw

    # Optional second "parallel" axis over the HW tiles: lets both v7x
    # TensorCores work even when B == 1 (no-op on single-TC generations).
    if hw_splits is None:
        hw_splits = 2 if (num_tiles % 2 == 0 and num_tiles >= 2) else 1
    assert num_tiles % hw_splits == 0
    tps = num_tiles // hw_splits           # tiles per split (reduction axis)

    # NCHW is already (B, D, H*W)-contiguous: reshape only, no XLA transpose.
    z_bd = z_nchw.reshape(B, D, HW)

    # Hoist loop-invariant codebook work out of the kernel body.
    emb_f32 = emb.astype(jnp.float32)
    emb_neg2 = -2.0 * emb_f32                                   # (K, D)
    emb_t = emb_f32.T                                           # (D, K)
    e_sq = jnp.sum(emb_f32 * emb_f32, axis=1, keepdims=True)    # (K, 1)

    grid = (B, hw_splits, tps)
    out_shapes = (
        jax.ShapeDtypeStruct((B, D, HW), z_nchw.dtype),            # zq (NCHW)
        jax.ShapeDtypeStruct((B, 1, HW), jnp.int32),               # nearest idx
        jax.ShapeDtypeStruct((B * hw_splits, 1, 1), jnp.float32),  # sum((zq-z)^2)
        jax.ShapeDtypeStruct((B * hw_splits, K, 1), jnp.float32),  # code counts
    )
    in_specs = [
        pl.BlockSpec((1, D, tile_hw), lambda b, c, t: (b, 0, c * tps + t)),
        # Constant codebook blocks: index_map == (0, 0) -> DMA'd once.  (At
        # realistic K, also mark these pipeline_mode=pl.Buffered(1) so they are
        # not double-buffered; negligible at K=32.)
        pl.BlockSpec((K, D), lambda b, c, t: (0, 0)),
        pl.BlockSpec((D, K), lambda b, c, t: (0, 0)),
        pl.BlockSpec((K, 1), lambda b, c, t: (0, 0)),
    ]
    out_specs = (
        pl.BlockSpec((1, D, tile_hw), lambda b, c, t: (b, 0, c * tps + t)),
        pl.BlockSpec((1, 1, tile_hw), lambda b, c, t: (b, 0, c * tps + t)),
        # Accumulators: one block per (batch, split) -> resident over t only.
        pl.BlockSpec((1, 1, 1), lambda b, c, t: (b * hw_splits + c, 0, 0)),
        pl.BlockSpec((1, K, 1), lambda b, c, t: (b * hw_splits + c, 0, 0)),
    )

    zq_bd, idx_b, sqerr_bc, counts_bc = pl.pallas_call(
        _vq_kernel,
        grid=grid,
        in_specs=in_specs,
        out_specs=out_specs,
        out_shape=out_shapes,
        compiler_params=pltpu.CompilerParams(
            dimension_semantics=("parallel", "parallel", "arbitrary")),
    )(z_bd, emb_neg2, emb_t, e_sq)

    zq_nchw = zq_bd.reshape(B, D, H, W)   # already NCHW; reshape only

    # loss = mean((zq.detach()-z)^2) + beta*mean((zq-z.detach())^2)
    # forward value == (1 + beta) * MSE(zq, z)
    mse = jnp.sum(sqerr_bc) / jnp.float32(N * D)
    loss = (1.0 + beta) * mse

    counts = jnp.sum(counts_bc, axis=(0, 2))                    # (K,)
    e_mean = counts / jnp.float32(N)
    perplexity = jnp.exp(-jnp.sum(e_mean * jnp.log(e_mean + 1e-10)))

    # PyTorch-shaped outputs: rebuild the one-hot from the indices in the
    # wrapper (one cheap compare) instead of streaming it from the kernel.
    idx_flat = idx_b.reshape(N)
    nearest_idx = idx_flat.reshape(N, 1)
    nearest = (idx_flat[:, None] ==
               jnp.arange(K, dtype=jnp.int32)[None, :]).astype(jnp.float32)

    # Straight-through estimator: forward value of z + (zq - z).detach() is zq.
    # TODO(synk): detach/stop_gradient semantics only matter for backward; a
    # custom_vjp is required before using this in training.
    return zq_nchw, loss, perplexity, nearest, nearest_idx


if __name__ == "__main__":
    n_emb = 32
    emb_dim = 4
    beta = 0.25
    B, H, W = 2, 16, 16

    key = jax.random.PRNGKey(0)
    kz, ke = jax.random.split(key)

    # module input: NCHW, channels == emb_dim
    z = jax.random.normal(kz, (B, emb_dim, H, W), dtype=jnp.float32)
    # deterministic codebook init, matching nn.Embedding(...).uniform_(-1/K, 1/K)
    init = 1.0 / n_emb
    emb = jax.random.uniform(ke, (n_emb, emb_dim), dtype=jnp.float32,
                             minval=-init, maxval=init)

    zq, loss, perplexity, nearest, nearest_idx = vector_quantizer_forward(
        z, emb, beta=beta)
    jax.block_until_ready((zq, loss, perplexity, nearest, nearest_idx))

    N = B * H * W
    assert zq.shape == z.shape
    assert nearest.shape == (N, n_emb)
    assert nearest_idx.shape == (N, 1)

    # ---- exact pure-JAX reference (same math as the PyTorch module) ----
    z_flat = jnp.transpose(z, (0, 2, 3, 1)).reshape(-1, emb_dim)
    d_ref = (jnp.sum(z_flat ** 2, axis=1, keepdims=True)
             + jnp.sum(emb ** 2, axis=1)
             - 2.0 * jnp.matmul(z_flat, emb.T,
                                precision=jax.lax.Precision.HIGHEST))
    idx_ref = jnp.argmin(d_ref, axis=1)

    kidx = nearest_idx[:, 0]

    # (a) near-optimality: any deviation from the exact argmin must be a
    #     numerical near-tie (distance matmul runs at DEFAULT precision).
    d_sel = jnp.take_along_axis(d_ref, kidx[:, None], axis=1)[:, 0]
    d_min = jnp.min(d_ref, axis=1)
    assert float(jnp.max(d_sel - d_min)) < 2e-2
    match = float(jnp.mean((kidx == idx_ref).astype(jnp.float32)))
    assert match > 0.95, f"argmin mismatch fraction {1.0 - match}"

    # (b) self-consistency of every output with the kernel's own indices.
    zq_from_idx = jnp.transpose(emb[kidx].reshape(B, H, W, emb_dim),
                                (0, 3, 1, 2))
    assert float(jnp.max(jnp.abs(zq - zq_from_idx))) < 1e-5
    assert bool(jnp.all(jnp.sum(nearest, axis=1) == 1.0))
    assert bool(jnp.all(jnp.argmax(nearest, axis=1) == kidx))
    loss_from_idx = (1.0 + beta) * jnp.mean((zq_from_idx - z) ** 2)
    assert bool(jnp.allclose(loss, loss_from_idx, rtol=1e-4, atol=1e-6))
    cnt_from_idx = jnp.sum(
        (kidx[:, None] == jnp.arange(n_emb)[None, :]).astype(jnp.float32),
        axis=0)
    e_mean_k = cnt_from_idx / jnp.float32(N)
    perp_from_idx = jnp.exp(-jnp.sum(e_mean_k * jnp.log(e_mean_k + 1e-10)))
    assert bool(jnp.allclose(perplexity, perp_from_idx, rtol=1e-4, atol=1e-5))

    # (c) against the exact-argmin reference (flip-tolerant tolerances).
    zq_ref = jnp.transpose(emb[idx_ref].reshape(B, H, W, emb_dim), (0, 3, 1, 2))
    loss_ref = (1.0 + beta) * jnp.mean((zq_ref - z) ** 2)
    assert bool(jnp.allclose(loss, loss_ref, rtol=1e-3, atol=1e-5))
    cnt_ref = jnp.sum((idx_ref[:, None] == jnp.arange(n_emb)[None, :])
                      .astype(jnp.float32), axis=0)
    e_mean_ref = cnt_ref / jnp.float32(N)
    perp_ref = jnp.exp(-jnp.sum(e_mean_ref * jnp.log(e_mean_ref + 1e-10)))
    assert float(jnp.abs(perplexity - perp_ref)) < 0.1 * float(perp_ref)

    # (d) tiling / hw-split consistency: forced multi-tile and split-across-
    #     cores configs must agree with the single-tile run.
    for cfg in (dict(tile_hw=128),              # num_tiles=2 -> hw_splits=2
                dict(tile_hw=128, hw_splits=1)):  # accumulate across t
        zq2, loss2, perp2, nearest2, idx2 = vector_quantizer_forward(
            z, emb, beta=beta, **cfg)
        jax.block_until_ready((zq2, loss2, perp2, nearest2, idx2))
        kidx2 = idx2[:, 0]
        assert float(jnp.mean((kidx2 == kidx).astype(jnp.float32))) > 0.99
        zq2_from = jnp.transpose(emb[kidx2].reshape(B, H, W, emb_dim),
                                 (0, 3, 1, 2))
        assert float(jnp.max(jnp.abs(zq2 - zq2_from))) < 1e-5
        assert bool(jnp.allclose(loss2, loss, rtol=1e-3, atol=1e-5))
        assert bool(jnp.allclose(perp2, perplexity, rtol=2e-2, atol=1e-3))

    print("KERNEL_OK")
</pallas_src>

<mosaic_0001>
module attributes {stable_mosaic.version = 11 : i64} {
  func.func @_vq_kernel(%arg0: i32, %arg1: i32, %arg2: i32, %arg3: memref<1x4x256xf32, #tpu.memory_space<vmem>>, %arg4: memref<32x4xf32, #tpu.memory_space<vmem>>, %arg5: memref<4x32xf32, #tpu.memory_space<vmem>>, %arg6: memref<32x1xf32, #tpu.memory_space<vmem>>, %arg7: memref<1x4x256xf32, #tpu.memory_space<vmem>>, %arg8: memref<1x1x256xi32, #tpu.memory_space<vmem>>, %arg9: memref<1x1x1xf32, #tpu.memory_space<vmem>>, %arg10: memref<1x32x1xf32, #tpu.memory_space<vmem>>) attributes {dimension_semantics = [#tpu.dimension_semantics<parallel>, #tpu.dimension_semantics<parallel>, #tpu.dimension_semantics<arbitrary>], iteration_bounds = array<i64: 2, 1, 1>, scalar_prefetch = 0 : i64, scratch_operands = 0 : i64, tpu.core_type = #tpu.core_type<tc>, window_params = [{transform_indices = @transform_0, window_bounds = array<i64: 1, 4, 256>}, {pipeline_mode = #tpu.pipeline_mode<synchronous>, transform_indices = @transform_1, window_bounds = array<i64: 32, 4>}, {pipeline_mode = #tpu.pipeline_mode<synchronous>, transform_indices = @transform_2, window_bounds = array<i64: 4, 32>}, {pipeline_mode = #tpu.pipeline_mode<synchronous>, transform_indices = @transform_3, window_bounds = array<i64: 32, 1>}, {transform_indices = @transform_4, window_bounds = array<i64: 1, 4, 256>}, {transform_indices = @transform_5, window_bounds = array<i64: 1, 1, 256>}, {transform_indices = @transform_6, window_bounds = array<i64: 1, 1, 1>}, {transform_indices = @transform_7, window_bounds = array<i64: 1, 32, 1>}]} {
    %c0_i32 = arith.constant 0 : i32
    %0 = arith.cmpi eq, %arg2, %c0_i32 : i32
    %1 = arith.extui %0 : i1 to i32
    %c0_i32_0 = arith.constant 0 : i32
    %2 = arith.cmpi ne, %1, %c0_i32_0 : i32
    scf.if %2 {
      %cst_32 = arith.constant 0.000000e+00 : f32
      %47 = vector.broadcast %cst_32 : f32 to vector<1x1x1xf32>
      %c0_33 = arith.constant 0 : index
      %c0_34 = arith.constant 0 : index
      %c0_35 = arith.constant 0 : index
      %48 = vector.load %arg9[%c0_33, %c0_34, %c0_35] : memref<1x1x1xf32, #tpu.memory_space<vmem>>, vector<1x1x1xf32>
      tpu.vector_store %arg9[%c0_33, %c0_34, %c0_35], %47 {strides = array<i32>} : memref<1x1x1xf32, #tpu.memory_space<vmem>>, vector<1x1x1xf32>,
      %cst_36 = arith.constant 0.000000e+00 : f32
      %49 = vector.broadcast %cst_36 : f32 to vector<1x32x1xf32>
      %c0_37 = arith.constant 0 : index
      %c0_38 = arith.constant 0 : index
      %c0_39 = arith.constant 0 : index
      %50 = vector.load %arg10[%c0_37, %c0_38, %c0_39] : memref<1x32x1xf32, #tpu.memory_space<vmem>>, vector<1x32x1xf32>
      tpu.vector_store %arg10[%c0_37, %c0_38, %c0_39], %49 {strides = array<i32>} : memref<1x32x1xf32, #tpu.memory_space<vmem>>, vector<1x32x1xf32>,
    } else {
    }
    %c0 = arith.constant 0 : index
    %c0_1 = arith.constant 0 : index
    %c0_2 = arith.constant 0 : index
    %3 = vector.load %arg3[%c0, %c0_1, %c0_2] : memref<1x4x256xf32, #tpu.memory_space<vmem>>, vector<1x4x256xf32>
    %4 = vector.shape_cast %3 : vector<1x4x256xf32> to vector<4x256xf32>
    %c0_3 = arith.constant 0 : index
    %c0_4 = arith.constant 0 : index
    %5 = vector.load %arg4[%c0_3, %c0_4] : memref<32x4xf32, #tpu.memory_space<vmem>>, vector<32x4xf32>
    %c0_5 = arith.constant 0 : index
    %c0_6 = arith.constant 0 : index
    %6 = vector.load %arg5[%c0_5, %c0_6] : memref<4x32xf32, #tpu.memory_space<vmem>>, vector<4x32xf32>
    %c0_7 = arith.constant 0 : index
    %c0_8 = arith.constant 0 : index
    %7 = vector.load %arg6[%c0_7, %c0_8] : memref<32x1xf32, #tpu.memory_space<vmem>>, vector<32x1xf32>
    %cst = arith.constant dense<0.000000e+00> : vector<32x256xf32>
    %8 = tpu.matmul %5, %4, %cst {dimension_numbers = #tpu.dot_dimension_numbers<[1], [0], [0], [1], [0, 0, 1, 1], [], []>} : vector<32x4xf32>, vector<4x256xf32>, vector<32x256xf32> -> vector<32x256xf32>
    %9 = vector.broadcast %7 : vector<32x1xf32> to vector<32x256xf32>
    %10 = arith.addf %8, %9 : vector<32x256xf32>
    %cst_9 = arith.constant dense<0x7F800000> : vector<256xf32>
    %11 = vector.multi_reduction <minimumf>, %10, %cst_9 [0] : vector<32x256xf32> to vector<256xf32>
    %12 = vector.shape_cast %11 : vector<256xf32> to vector<1x256xf32>
    %13 = tpu.iota {dimensions = array<i32: 0>} : vector<32x256xi32>
    %14 = vector.broadcast %12 : vector<1x256xf32> to vector<32x256xf32>
    %15 = arith.cmpf oeq, %10, %14 : vector<32x256xf32>
    %c32_i32 = arith.constant 32 : i32
    %16 = vector.broadcast %c32_i32 : i32 to vector<32x256xi32>
    %17 = arith.select %15, %13, %16 : vector<32x256xi1>, vector<32x256xi32>
    %cst_10 = arith.constant dense<2147483647> : vector<256xi32>
    %18 = vector.multi_reduction <minsi>, %17, %cst_10 [0] : vector<32x256xi32> to vector<256xi32>
    %19 = vector.shape_cast %18 : vector<256xi32> to vector<1x256xi32>
    %20 = vector.broadcast %19 : vector<1x256xi32> to vector<32x256xi32>
    %21 = arith.cmpi eq, %13, %20 : vector<32x256xi32>
    %22 = arith.extui %21 : vector<32x256xi1> to vector<32x256xi32>
    %23 = arith.sitofp %22 : vector<32x256xi32> to vector<32x256xf32>
    %cst_11 = arith.constant dense<0.000000e+00> : vector<4x256xf32>
    %24 = tpu.matmul %6, %23, %cst_11 {dimension_numbers = #tpu.dot_dimension_numbers<[1], [0], [0], [1], [0, 0, 1, 1], [], []>, precision = #tpu.contract_precision<fp32>} : vector<4x32xf32>, vector<32x256xf32>, vector<4x256xf32> -> vector<4x256xf32>
    %c0_12 = arith.constant 0 : index
    %c0_13 = arith.constant 0 : index
    %c0_14 = arith.constant 0 : index
    %25 = vector.load %arg7[%c0_12, %c0_13, %c0_14] : memref<1x4x256xf32, #tpu.memory_space<vmem>>, vector<1x4x256xf32>
    %26 = vector.shape_cast %25 : vector<1x4x256xf32> to vector<4x256xf32>
    %27 = vector.shape_cast %24 : vector<4x256xf32> to vector<1x4x256xf32>
    tpu.vector_store %arg7[%c0_12, %c0_13, %c0_14], %27 {strides = array<i32>} : memref<1x4x256xf32, #tpu.memory_space<vmem>>, vector<1x4x256xf32>,
    %c0_15 = arith.constant 0 : index
    %c0_16 = arith.constant 0 : index
    %c0_17 = arith.constant 0 : index
    %28 = vector.load %arg8[%c0_15, %c0_16, %c0_17] : memref<1x1x256xi32, #tpu.memory_space<vmem>>, vector<1x1x256xi32>
    %29 = vector.shape_cast %28 : vector<1x1x256xi32> to vector<1x256xi32>
    %30 = vector.shape_cast %19 : vector<1x256xi32> to vector<1x1x256xi32>
    tpu.vector_store %arg8[%c0_15, %c0_16, %c0_17], %30 {strides = array<i32>} : memref<1x1x256xi32, #tpu.memory_space<vmem>>, vector<1x1x256xi32>,
    %31 = arith.subf %24, %4 : vector<4x256xf32>
    %c0_18 = arith.constant 0 : index
    %c0_19 = arith.constant 0 : index
    %c0_20 = arith.constant 0 : index
    %32 = vector.load %arg9[%c0_18, %c0_19, %c0_20] : memref<1x1x1xf32, #tpu.memory_space<vmem>>, vector<1x1x1xf32>
    %33 = arith.mulf %31, %31 : vector<4x256xf32>
    %34 = vector.shape_cast %33 : vector<4x256xf32> to vector<1x4x256xf32>
    %cst_21 = arith.constant dense<0.000000e+00> : vector<1xf32>
    %35 = vector.multi_reduction <add>, %34, %cst_21 [1, 2] : vector<1x4x256xf32> to vector<1xf32>
    %36 = vector.shape_cast %35 : vector<1xf32> to vector<1x1x1xf32>
    %37 = vector.extract %36[0, 0, 0] : f32 from vector<1x1x1xf32>
    %38 = vector.broadcast %37 : f32 to vector<1x1x1xf32>
    %39 = arith.addf %32, %38 : vector<1x1x1xf32>
    %c0_22 = arith.constant 0 : index
    %c0_23 = arith.constant 0 : index
    %c0_24 = arith.constant 0 : index
    %40 = vector.load %arg9[%c0_22, %c0_23, %c0_24] : memref<1x1x1xf32, #tpu.memory_space<vmem>>, vector<1x1x1xf32>
    tpu.vector_store %arg9[%c0_22, %c0_23, %c0_24], %39 {strides = array<i32>} : memref<1x1x1xf32, #tpu.memory_space<vmem>>, vector<1x1x1xf32>,
    %c0_25 = arith.constant 0 : index
    %c0_26 = arith.constant 0 : index
    %c0_27 = arith.constant 0 : index
    %41 = vector.load %arg10[%c0_25, %c0_26, %c0_27] : memref<1x32x1xf32, #tpu.memory_space<vmem>>, vector<1x32x1xf32>
    %cst_28 = arith.constant dense<0.000000e+00> : vector<32xf32>
    %42 = vector.multi_reduction <add>, %23, %cst_28 [1] : vector<32x256xf32> to vector<32xf32>
    %43 = vector.shape_cast %42 : vector<32xf32> to vector<32x1xf32>
    %44 = vector.shape_cast %43 : vector<32x1xf32> to vector<1x32x1xf32>
    %45 = arith.addf %41, %44 : vector<1x32x1xf32>
    %c0_29 = arith.constant 0 : index
    %c0_30 = arith.constant 0 : index
    %c0_31 = arith.constant 0 : index
    %46 = vector.load %arg10[%c0_29, %c0_30, %c0_31] : memref<1x32x1xf32, #tpu.memory_space<vmem>>, vector<1x32x1xf32>
    tpu.vector_store %arg10[%c0_29, %c0_30, %c0_31], %45 {strides = array<i32>} : memref<1x32x1xf32, #tpu.memory_space<vmem>>, vector<1x32x1xf32>,
    return
  }
  func.func @transform_0(%arg0: i32, %arg1: i32, %arg2: i32) -> (i32, i32, i32) {
    %c1_i32 = arith.constant 1 : i32
    %0 = arith.muli %arg1, %c1_i32 : i32
    %1 = arith.addi %0, %arg2 : i32
    %c0_i32 = arith.constant 0 : i32
    %c0_i32_0 = arith.constant 0 : i32
    return %arg0, %c0_i32, %1 : i32, i32, i32
  }
  func.func @transform_1(%arg0: i32, %arg1: i32, %arg2: i32) -> (i32, i32) {
    %c0_i32 = arith.constant 0 : i32
    %c0_i32_0 = arith.constant 0 : i32
    %c0_i32_1 = arith.constant 0 : i32
    return %c0_i32, %c0_i32_0 : i32, i32
  }
  func.func @transform_2(%arg0: i32, %arg1: i32, %arg2: i32) -> (i32, i32) {
    %c0_i32 = arith.constant 0 : i32
    %c0_i32_0 = arith.constant 0 : i32
    %c0_i32_1 = arith.constant 0 : i32
    return %c0_i32, %c0_i32_0 : i32, i32
  }
  func.func @transform_3(%arg0: i32, %arg1: i32, %arg2: i32) -> (i32, i32) {
    %c0_i32 = arith.constant 0 : i32
    %c0_i32_0 = arith.constant 0 : i32
    %c0_i32_1 = arith.constant 0 : i32
    return %c0_i32, %c0_i32_0 : i32, i32
  }
  func.func @transform_4(%arg0: i32, %arg1: i32, %arg2: i32) -> (i32, i32, i32) {
    %c1_i32 = arith.constant 1 : i32
    %0 = arith.muli %arg1, %c1_i32 : i32
    %1 = arith.addi %0, %arg2 : i32
    %c0_i32 = arith.constant 0 : i32
    %c0_i32_0 = arith.constant 0 : i32
    return %arg0, %c0_i32, %1 : i32, i32, i32
  }
  func.func @transform_5(%arg0: i32, %arg1: i32, %arg2: i32) -> (i32, i32, i32) {
    %c1_i32 = arith.constant 1 : i32
    %0 = arith.muli %arg1, %c1_i32 : i32
    %1 = arith.addi %0, %arg2 : i32
    %c0_i32 = arith.constant 0 : i32
    %c0_i32_0 = arith.constant 0 : i32
    return %arg0, %c0_i32, %1 : i32, i32, i32
  }
  func.func @transform_6(%arg0: i32, %arg1: i32, %arg2: i32) -> (i32, i32, i32) {
    %c1_i32 = arith.constant 1 : i32
    %0 = arith.muli %arg0, %c1_i32 : i32
    %1 = arith.addi %0, %arg1 : i32
    %c0_i32 = arith.constant 0 : i32
    %c0_i32_0 = arith.constant 0 : i32
    %c0_i32_1 = arith.constant 0 : i32
    return %1, %c0_i32, %c0_i32_0 : i32, i32, i32
  }
  func.func @transform_7(%arg0: i32, %arg1: i32, %arg2: i32) -> (i32, i32, i32) {
    %c1_i32 = arith.constant 1 : i32
    %0 = arith.muli %arg0, %c1_i32 : i32
    %1 = arith.addi %0, %arg1 : i32
    %c0_i32 = arith.constant 0 : i32
    %c0_i32_0 = arith.constant 0 : i32
    %c0_i32_1 = arith.constant 0 : i32
    return %1, %c0_i32, %c0_i32_0 : i32, i32, i32
  }
}

</mosaic_0001>

<bundles_post_ra>
// kernel: vector_quantizer_forward.1
= control target key start
LH: loop header
LB: loop body
LE: loop exit
PB: predicated region body
PF: predicated region fallthrough
CT: control target
= control target key end

     0   :  { %s1616_s24 = smov 0   ;;  %s1618_s25 = smov 0   ;;  %s1977_s0 = inlined_call_operand.vmem [shape: f32[2,4,256], index: 0, kind: input, shape index: {}]   ;;  %s1978_s1 = inlined_call_operand.vmem [shape: f32[32,4], index: 1, kind: input, shape index: {}]   ;;  %s1979_s2 = inlined_call_operand.vmem [shape: f32[4,32], index: 2, kind: input, shape index: {}]   ;;  %s1980_s3 = inlined_call_operand.vmem [shape: f32[32,1], index: 3, kind: input, shape index: {}]   ;;  %s1981_s4 = inlined_call_operand.vmem [shape: f32[2,4,256], index: 4, kind: output, shape index: {0}]   ;;  %s1982_s5 = inlined_call_operand.vmem [shape: s32[2,1,256], index: 5, kind: output, shape index: {1}]   ;;  %s1983_s6 = inlined_call_operand.vmem [shape: f32[2,1,1], index: 6, kind: output, shape index: {2}]   ;;  %s1984_s7 = inlined_call_operand.vmem [shape: f32[2,32,1], index: 7, kind: output, shape index: {3}]  }
   0x1   :  { %s1620_s26 = smov 0  }
   0x2 LB: > { %s37_s27 = sadd.s32 1, %s1566_s25  ;;  %p1464_p0 = scmp.ge.s32.totalorder %s1570_s26, 1  ;;  %s1570_s26 = sphi %s1620_s26, %s18_s26   ;;  %s1566_s25 = sphi %s1618_s25, %s1988_s25   ;;  %s1562_s24 = sphi %s1616_s24, %s1987_s24  }
   0x3   : > { %p39_p1 = scmp.ge.s32.totalorder %s37_s27, 2  ;;  %p286_p2 = scmp.lt.s32.totalorder %s1570_s26, 3 }
   0x5   : > { %s1990_s27 = smov (%p39_p1, %s37_s27), 0  ;;  %p287_p3 = pnand %p1464_p0, %p286_p2 }
   0x6   : > { %p349_p4 = scmp.lt.s32.totalorder (!%p287_p3), %s1562_s24, 1 }
   0x7   : > { %290 = sbr.rel (%p287_p3) target bundleno = 711 (0x2c7), region = 36 }
   0xc   : > { %v1572_v0 = vmov 0.0   ;;  %v411_v1 = vld [vmem:[%s1980_s3] sm:$0xff]  ;;  %s1992_s24 = smov (!%p349_p4, %s1562_s24), 1  ;;  %v1573_v2 = vmov 0   ;;  %v413_v3 = vld [vmem:[%s1980_s3 + $0x10] sm:$0xff]  ;;  %v412_v4 = vld [vmem:[%s1980_s3 + $0x8] sm:$0xff]  ;;  %v562_v39 = vlaneseq }
   0xd   : > { %519 = vmatprep.mubr.f32.mxu0 %v1572_v0  ;;  %713 = vmatprep.mubr.f32.mxu1 %v1572_v0  ;;  %s1512_s9 = sshll.u32 %s1992_s24, 3  ;;  %v414_v5 = vld [vmem:[%s1980_s3 + $0x18] sm:$0xff]  ;;  %vm450_vm0 = vcmask 1043456   ;;  %v406_v8 = vld [vmem:[%s1978_s1] sm:$0xff]  ;;  %vm437_vm1 = vcmask 31744   ;;  %v407_v9 = vld [vmem:[%s1978_s1 + $0x8] sm:$0xff]  ;;  %s385_s21 = scalar_lea.vmem %s1983_s6, %s1992_s24 }
   0xe   : > { %1545 = vset.pattern.permute.xlu0 %v1573_v2  ;;  %1546 = vset.pattern.permute.xlu1 %v1573_v2  ;;  %s356_s16 = scalar_lea.vmem %s1977_s0, %s1512_s9  ;;  %v408_v10 = vld [vmem:[%s1978_s1 + $0x10] sm:$0xff]  ;;  %v409_v11 = vld [vmem:[%s1978_s1 + $0x18] sm:$0xff]  ;;  %s1514_s29 = sshll.u32 %s1992_s24, 5  ;;  %vm400_vm2 = vcmask 7168   ;;  %v1701_v44 = vshrl.u32 %v562_v39, 7  ;;  %vm637_vm9 = vcmask 261120  }
   0xf   : > { %417 = vperm.xlu0 %1545, %v411_v1   ;;  %427 = vperm.xlu1 %1546, %v413_v3   ;;  %v1656_v6 = vld [vmem:[%s356_s16] sm:$0xff]  ;;  %s1686_s10 = scalar_lea.vmem %s1984_s7, %s1514_s29  ;;  %s1469_s13 = sshll.u32 %s1992_s24, 1 }
  0x10   : > { %v1660_v7 = vcombine.high %v1656_v6, %v1656_v6  ;;  %401 = vst.msk [vmem:[%s1686_s10] sm:$0xff] %vm400_vm2, %v1572_v0  ;;  %402 = vst.msk [vmem:[%s1686_s10 + $0x8] sm:$0xff] %vm400_vm2, %v1572_v0  ;;  %v1704_v49 = vadd.s32 8, %v1701_v44  ;;  %v1707_v50 = vadd.s32 16, %v1701_v44  ;;  %v1710_v51 = vadd.s32 24, %v1701_v44  ;;  %s379_s16 = scalar_lea.vmem %s1982_s5, %s1469_s13  ;;  %s368_s19 = scalar_lea.vmem %s1981_s4, %s1512_s9 }
  0x11   : > { %403 = vst.msk [vmem:[%s1686_s10 + $0x10] sm:$0xff] %vm400_vm2, %v1572_v0  ;;  %404 = vst.msk [vmem:[%s1686_s10 + $0x18] sm:$0xff] %vm400_vm2, %v1572_v0  ;;  %v410_v61 = vld [vmem:[%s1979_s2] sm:$0xf] }
  0x12   : > { %1472 = vmatprep.subr.msk.mxu0 %vm450_vm0, %v1660_v7 }
  0x13   : > { %422 = vperm.xlu0 %1545, %v412_v4   ;;  %432 = vperm.xlu1 %1546, %v414_v5   ;;  %v639_v5 = vsel %vm637_vm9, %v410_v61, 0 }
  0x14   : > { %1473 = vmatpush1.msk.msra.mxu0 %vm450_vm0, %v1656_v6 }
  0x15   : > { %1474 = vmatmul.mubr.msk.f32.vlgmr.msra.gmra.mxu0 %vm437_vm1, %v406_v8 }
  0x16   : > { %525 = vmatprep.mubr.f32.mxu0 %v1572_v0 }
  0x19   : > { %1475 = vmatmul.mubr.msk.f32.gmra.mxu0 %vm437_vm1, %v407_v9 }
  0x1a   : > { %531 = vmatprep.mubr.f32.mxu0 %v1572_v0 }
  0x1d   : > { %1476 = vmatmul.mubr.msk.f32.gmra.mxu0 %vm437_vm1, %v408_v10 }
  0x1e   : > { %537 = vmatprep.mubr.f32.mxu0 %v1572_v0 }
  0x21   : > { %1477 = vmatmul.mubr.msk.f32.gmra.mxu0 %vm437_vm1, %v409_v11  ;;  %v1723_v11 = vand.u32 4294901760, %v639_v5 }
  0x22   : > { %917 = vmatprep.mubr.f32.mxu0 %v1572_v0 }
  0x8a   : > { %v418_v14 = vpop.permute.xlu0 %417  ;;  %v428_v16 = vpop.permute.xlu1 %427 }
  0x8e   : > { %v423_v19 = vpop.permute.xlu0 %422  ;;  %v433_v22 = vpop.permute.xlu1 %432 }
  0xd5   : > { %v521_v12 = vpop.f32.mrf.mxu0 }
  0xd6   : > { %v522_v24 = vadd.f32 %v521_v12, %v418_v14 }
  0xd7   : > { %v523_v13 = vpop.f32.mrf.mxu0 }
  0xd8   : > { %v524_v28 = vadd.f32 %v523_v13, %v418_v14 }
  0xd9   : > { %v527_v15 = vpop.f32.mrf.mxu0 }
  0xda   : > { %v528_v25 = vadd.f32 %v527_v15, %v423_v19  ;;  %v1574_v15 = vmov 1966171168  }
  0xdb   : > { %v529_v17 = vpop.f32.mrf.mxu0 }
  0xdc   : > { %v530_v30 = vadd.f32 %v529_v17, %v423_v19 }
  0xdd   : > { %v533_v18 = vpop.f32.mrf.mxu0 }
  0xde   : > { %v534_v21 = vadd.f32 %v533_v18, %v428_v16  ;;  %v1726_v18 = vsub.f32 %v639_v5, %v1723_v11 }
  0xdf   : > { %v535_v20 = vpop.f32.mrf.mxu0 }
  0xe0   : > { %v536_v26 = vadd.f32 %v535_v20, %v428_v16  ;;  %v544_v31 = vmin.f32 %v522_v24, %v534_v21  ;;  %v1191_v16 = vunpack.c.l.s4 %v1574_v15 }
  0xe1   : > { %v539_v23 = vpop.f32.mrf.mxu0 }
  0xe2   : > { %v540_v27 = vadd.f32 %v539_v23, %v433_v22  ;;  %v553_v34 = vmin.f32 %v524_v28, %v536_v26 }
  0xe3   : > { %v541_v29 = vpop.f32.mrf.mxu0 }
  0xe4   : > { %v545_v32 = vmin.f32 %v528_v25, %v540_v27  ;;  %v542_v33 = vadd.f32 %v541_v29, %v433_v22  ;;  %v1192_v22 = vunpack.c.0.s8 %v1191_v16 }
  0xe6   : > { %v546_v35 = vmin.f32 %v544_v31, %v545_v32  ;;  %v554_v36 = vmin.f32 %v530_v30, %v542_v33  ;;  %v1195_v29 = vsub.s32 %v1192_v22, %v1701_v44 }
  0xe8   : > { %v547_v37 = vrot.slane %v546_v35, 4  ;;  %v555_v38 = vmin.f32 %v553_v34, %v554_v36 }
  0xea   : > { %v548_v40 = vmin.f32 %v546_v35, %v547_v37  ;;  %v556_v41 = vrot.slane %v555_v38, 4 }
  0xec   : > { %v549_v42 = vrot.slane %v548_v40, 2  ;;  %v557_v43 = vmin.f32 %v555_v38, %v556_v41 }
  0xee   : > { %v550_v45 = vmin.f32 %v548_v40, %v549_v42  ;;  %v558_v46 = vrot.slane %v557_v43, 2 }
  0xf0   : > { %v551_v47 = vrot.slane %v550_v45, 1  ;;  %v559_v48 = vmin.f32 %v557_v43, %v558_v46 }
  0xf2   : > { %v552_v52 = vmin.f32 %v550_v45, %v551_v47  ;;  %v560_v53 = vrot.slane %v559_v48, 1 }
  0xf4   : > { %vm567_vm3 = vcmp.eq.f32.partialorder %v522_v24, %v552_v52  ;;  %vm569_vm4 = vcmp.eq.f32.partialorder %v528_v25, %v552_v52  ;;  %vm571_vm5 = vcmp.eq.f32.partialorder %v534_v21, %v552_v52  ;;  %vm573_vm6 = vcmp.eq.f32.partialorder %v540_v27, %v552_v52 }
  0xf5   : > { %v575_v54 = vsel %vm567_vm3, %v1701_v44, 32  ;;  %v577_v55 = vsel %vm569_vm4, %v1704_v49, 32  ;;  %v579_v56 = vsel %vm571_vm5, %v1707_v50, 32  ;;  %v581_v57 = vsel %vm573_vm6, %v1710_v51, 32 }
  0xf6   : > { %vm583_vm7 = vcmp.lt.s32.totalorder %v575_v54, %v579_v56  ;;  %vm585_vm8 = vcmp.lt.s32.totalorder %v577_v55, %v581_v57  ;;  %v561_v58 = vmin.f32 %v559_v48, %v560_v53  ;;  %v716_v24 = vand.u32 4294901760, %v1726_v18 }
  0xf7   : > { %v584_v59 = vsel %vm583_vm7, %v575_v54, %v579_v56  ;;  %v586_v60 = vsel %vm585_vm8, %v577_v55, %v581_v57 }
  0xf8   : > { %vm587_vm10 = vcmp.lt.s32.totalorder %v584_v59, %v586_v60  ;;  %vm568_vm11 = vcmp.eq.f32.partialorder %v524_v28, %v561_v58  ;;  %vm570_vm12 = vcmp.eq.f32.partialorder %v530_v30, %v561_v58  ;;  %vm572_vm13 = vcmp.eq.f32.partialorder %v536_v26, %v561_v58 }
  0xf9   : > { %v588_v62 = vsel %vm587_vm10, %v584_v59, %v586_v60  ;;  %vm574_vm14 = vcmp.eq.f32.partialorder %v542_v33, %v561_v58  ;;  %v576_v63 = vsel %vm568_vm11, %v1701_v44, 32  ;;  %v578_v1 = vsel %vm570_vm12, %v1704_v49, 32 }
  0xfa   : > { %v589_v2 = vrot.slane %v588_v62, 4  ;;  %v580_v3 = vsel %vm572_vm13, %v1707_v50, 32  ;;  %v582_v4 = vsel %vm574_vm14, %v1710_v51, 32  ;;  %vm1749_vm12 = vcmp.lt.s32.totalorder %v562_v39, 256 }
  0xfb   : > { %vm598_vm15 = vcmp.lt.s32.totalorder %v576_v63, %v580_v3  ;;  %vm600_vm1 = vcmp.lt.s32.totalorder %v578_v1, %v582_v4  ;;  %v717_v33 = vsub.f32 %v1726_v18, %v716_v24  ;;  %v1575_v39 = vmov 1.0  }
  0xfc   : > { %vm590_vm3 = vcmp.lt.s32.totalorder %v588_v62, %v589_v2  ;;  %v599_v8 = vsel %vm598_vm15, %v576_v63, %v580_v3  ;;  %v601_v9 = vsel %vm600_vm1, %v578_v1, %v582_v4 }
  0xfd   : > { %v591_v10 = vsel %vm590_vm3, %v588_v62, %v589_v2  ;;  %vm602_vm4 = vcmp.lt.s32.totalorder %v599_v8, %v601_v9  ;;  %v718_v59 = vand.u32 4294901760, %v717_v33 }
  0xfe   : > { %v592_v12 = vrot.slane %v591_v10, 2  ;;  %v603_v13 = vsel %vm602_vm4, %v599_v8, %v601_v9 }
  0xff   : > { %v604_v14 = vrot.slane %v603_v13, 4 }
 0x100   : > { %vm593_vm5 = vcmp.lt.s32.totalorder %v591_v10, %v592_v12 }
 0x101   : > { %vm605_vm6 = vcmp.lt.s32.totalorder %v603_v13, %v604_v14  ;;  %v594_v17 = vsel %vm593_vm5, %v591_v10, %v592_v12  ;;  %vm398_vm5 = vcmask 0  }
 0x102   : > { %v606_v19 = vsel %vm605_vm6, %v603_v13, %v604_v14  ;;  %v595_v20 = vrot.slane %v594_v17, 1  ;;  %399 = vst.msk [vmem:[%s385_s21] sm:$0x1] %vm398_vm5, %v1572_v0 }
 0x103   : > { %v607_v21 = vrot.slane %v606_v19, 2 }
 0x104   : > { %vm596_vm7 = vcmp.lt.s32.totalorder %v594_v17, %v595_v20 }
 0x105   : > { %vm608_vm8 = vcmp.lt.s32.totalorder %v606_v19, %v607_v21  ;;  %v1728_v23 = vsel %vm596_vm7, %v594_v17, %v595_v20 }
 0x106   : > { %v609_v25 = vsel %vm608_vm8, %v606_v19, %v607_v21  ;;  %vm619_vm9 = vcmp.eq.s32.totalorder %v1710_v51, %v1728_v23  ;;  %vm617_vm10 = vcmp.eq.s32.totalorder %v1707_v50, %v1728_v23  ;;  %vm613_vm11 = vcmp.eq.s32.totalorder %v1701_v44, %v1728_v23 }
 0x107   : > { %v610_v26 = vrot.slane %v609_v25, 1  ;;  %v1484_v27 = vsel %vm619_vm9, 1.0, %v1572_v0  ;;  %v1743_v28 = vsel %vm617_vm10, 1.0, %v1572_v0  ;;  %vm615_vm13 = vcmp.eq.s32.totalorder %v1704_v49, %v1728_v23 }
 0x108   : > { %v1755_v31 = vsub.f32 %v1484_v27, %v1484_v27  ;;  %v1480_v32 = vsel %vm615_vm13, 1.0, %v1572_v0  ;;  %v1478_v35 = vsel %vm613_vm11, 1.0, %v1572_v0  ;;  %v1772_v36 = vsub.f32 %v1743_v28, %v1743_v28 }
 0x109   : > { %vm611_vm14 = vcmp.lt.s32.totalorder %v609_v25, %v610_v26  ;;  %v1774_v37 = vsub.f32 %v1480_v32, %v1480_v32  ;;  %v1817_v52 = vsub.f32 %v1478_v35, %v1478_v35 }
 0x10a   : > { %v1764_v34 = vsel %vm611_vm14, %v609_v25, %v610_v26  ;;  %v757_v47 = vand.u32 4294901760, %v1755_v31  ;;  %v769_v58 = vand.u32 4294901760, %v1772_v36 }
 0x10b   : > { %vm620_vm15 = vcmp.eq.s32.totalorder %v1710_v51, %v1764_v34  ;;  %v1189_v38 = vcombine.low %v1728_v23, %v1764_v34  ;;  %vm618_vm1 = vcmp.eq.s32.totalorder %v1707_v50, %v1764_v34  ;;  %vm614_vm3 = vcmp.eq.s32.totalorder %v1701_v44, %v1764_v34  ;;  %v1231_v50 = vld [vmem:[%s1686_s10] sm:$0xff] }
 0x10c   : > { %1486 = vmatprep.subr.msk.mxu1 %vm620_vm15, %v1575_v39  ;;  %v1485_v40 = vsel %vm620_vm15, 1.0, %v1572_v0  ;;  %v1479_v41 = vsel %vm614_vm3, 1.0, %v1572_v0  ;;  %vm616_vm4 = vcmp.eq.s32.totalorder %v1704_v49, %v1764_v34  ;;  %v1483_v42 = vsel %vm618_vm1, 1.0, %v1572_v0 }
 0x10d   : > { %1487 = vmatpush1.msk.msra.mxu1 %vm619_vm9, %v1575_v39  ;;  %v1196_v43 = vrot.slane %v1189_v38, %v1195_v29  ;;  %v750_v45 = vsub.f32 %v1485_v40, %v1485_v40  ;;  %v1235_v46 = vadd.f32 %v1479_v41, %v1478_v35  ;;  %v1815_v48 = vsub.f32 %v1479_v41, %v1479_v41 }
 0x10e   : > { %1488 = vmatprep.subr.msk.mxu1 %vm618_vm1, %v1575_v39  ;;  %v762_v53 = vsub.f32 %v1483_v42, %v1483_v42  ;;  %v1481_v54 = vsel %vm616_vm4, 1.0, %v1572_v0  ;;  %v758_v62 = vsub.f32 %v1755_v31, %v757_v47  ;;  %v781_v1 = vand.u32 4294901760, %v1774_v37 }
 0x10f   : > { %v1203_v55 = vrot.slane %v1196_v43, %v1195_v29  ;;  %1489 = vmatpush1.msk.msra.mxu1 %vm617_vm10, %v1575_v39  ;;  %863 = vmatprep.subr.mxu0 %v750_v45  ;;  %v774_v56 = vsub.f32 %v1481_v54, %v1481_v54  ;;  %v751_v57 = vand.u32 4294901760, %v750_v45  ;;  %v1244_v2 = vadd.f32 %v1485_v40, %v1484_v27 }
 0x110   : > { %1236 = vadd.xlane.f32.xlu1 %v1235_v46  ;;  %1490 = vmatprep.subr.msk.mxu1 %vm616_vm4, %v1575_v39  ;;  %v763_v60 = vand.u32 4294901760, %v762_v53  ;;  %v787_v4 = vand.u32 4294901760, %v1815_v48  ;;  %v793_v5 = vand.u32 4294901760, %v1817_v52  ;;  %v770_v9 = vsub.f32 %v1772_v36, %v769_v58 }
 0x111   : > { %1208 = vst.msk [vmem:[%s379_s16] sm:$0x3] %vm1749_vm12, %v1203_v55  ;;  %866 = vmatpush1.msra.mxu0 %v1755_v31  ;;  %1491 = vmatpush1.msk.msra.mxu1 %vm615_vm13, %v1575_v39  ;;  %v752_v61 = vsub.f32 %v750_v45, %v751_v57  ;;  %v775_v63 = vand.u32 4294901760, %v774_v56  ;;  %v1853_v12 = vadd.f32 %v1481_v54, %v1480_v32  ;;  %v759_v13 = vand.u32 4294901760, %v758_v62 }
 0x112   : > { %869 = vmatprep.subr.mxu0 %v762_v53  ;;  %1492 = vmatprep.subr.msk.mxu1 %vm614_vm3, %v1575_v39  ;;  %v764_v3 = vsub.f32 %v762_v53, %v763_v60  ;;  %v782_v14 = vsub.f32 %v1774_v37, %v781_v1  ;;  %v1858_v15 = vadd.f32 %v1483_v42, %v1743_v28  ;;  %v771_v19 = vand.u32 4294901760, %v770_v9  ;;  %v1212_v9 = vld [vmem:[%s385_s21] sm:$0x1] }
 0x113   : > { %872 = vmatpush1.msra.mxu0 %v1772_v36  ;;  %1493 = vmatpush1.msk.msra.mxu1 %vm613_vm11, %v1575_v39  ;;  %v753_v8 = vand.u32 4294901760, %v752_v61  ;;  %v776_v10 = vsub.f32 %v774_v56, %v775_v63  ;;  %v788_v17 = vsub.f32 %v1815_v48, %v787_v4  ;;  %v794_v20 = vsub.f32 %v1817_v52, %v793_v5 }
 0x114   : > { %875 = vmatprep.subr.mxu0 %v774_v56  ;;  %1245 = vadd.xlane.f32.xlu1 %v1244_v2  ;;  %v765_v16 = vand.u32 4294901760, %v764_v3  ;;  %v783_v22 = vand.u32 4294901760, %v782_v14 }
 0x115   : > { %719 = vmatmul.mubr.f32.vlgmr.msra.gmra.mxu1 %v718_v59  ;;  %878 = vmatpush1.msra.mxu0 %v1774_v37  ;;  %v777_v21 = vand.u32 4294901760, %v776_v10  ;;  %v789_v25 = vand.u32 4294901760, %v788_v17  ;;  %v795_v26 = vand.u32 4294901760, %v794_v20  ;;  %v1232_v59 = vld [vmem:[%s1686_s10 + $0x8] sm:$0xff] }
 0x116   : > { %754 = vmatprep.subr.mxu1 %v753_v8  ;;  %881 = vmatprep.subr.mxu0 %v1815_v48 }
 0x117   : > { %760 = vmatpush1.msra.mxu1 %v759_v13  ;;  %884 = vmatpush1.msra.mxu0 %v1817_v52 }
 0x118   : > { %766 = vmatprep.subr.mxu1 %v765_v16  ;;  %1035 = vmatprep.subr.mxu0 %v751_v57 }
 0x119   : > { %772 = vmatpush1.msra.mxu1 %v771_v19  ;;  %920 = vmatmul.mubr.f32.vlgmr.msra.gmra.mxu0 %v1726_v18 }
 0x11a   : > { %1039 = vmatpush1.msra.mxu0 %v757_v47  ;;  %778 = vmatprep.subr.mxu1 %v777_v21 }
 0x11b   : > { %1043 = vmatprep.subr.mxu0 %v763_v60  ;;  %784 = vmatpush1.msra.mxu1 %v783_v22 }
 0x11c   : > { %1047 = vmatpush1.msra.mxu0 %v769_v58  ;;  %790 = vmatprep.subr.mxu1 %v789_v25 }
 0x11d   : > { %1051 = vmatprep.subr.mxu0 %v775_v63  ;;  %796 = vmatpush1.msra.mxu1 %v795_v26 }
 0x11e   : > { %829 = vmatprep.mubr.f32.mxu1 %v1572_v0  ;;  %1055 = vmatpush1.msra.mxu0 %v781_v1  ;;  %v1233_v1 = vld [vmem:[%s1686_s10 + $0x10] sm:$0xff] }
 0x11f   : > { %831 = vmatmul.mubr.f32.vlgmr.msra.gmra.mxu1 %v1723_v11  ;;  %1494 = vmatprep.subr.msk.mxu1 %vm620_vm15, %v1575_v39 }
 0x120   : > { %1059 = vmatprep.subr.mxu0 %v787_v4  ;;  %1495 = vmatpush1.msk.msra.mxu1 %vm619_vm9, %v1575_v39 }
 0x121   : > { %1063 = vmatpush1.msra.mxu0 %v793_v5  ;;  %1496 = vmatprep.subr.msk.mxu1 %vm618_vm1, %v1575_v39 }
 0x122   : > { %1497 = vmatpush1.msk.msra.mxu1 %vm617_vm10, %v1575_v39  ;;  %998 = vmatprep.mubr.f32.mxu1 %v1572_v0 }
 0x123   : > { %1498 = vmatprep.subr.msk.mxu1 %vm616_vm4, %v1575_v39  ;;  %1096 = vmatprep.mubr.f32.mxu0 %v1572_v0 }
 0x124   : > { %1499 = vmatpush1.msk.msra.mxu1 %vm615_vm13, %v1575_v39  ;;  %1098 = vmatmul.mubr.f32.vlgmr.msra.gmra.mxu0 %v1723_v11 }
 0x125   : > { %1500 = vmatprep.subr.msk.mxu1 %vm614_vm3, %v1575_v39 }
 0x126   : > { %1501 = vmatpush1.msk.msra.mxu1 %vm613_vm11, %v1575_v39 }
 0x127   : > { %1002 = vmatmul.mubr.f32.vlgmr.msra.gmra.mxu1 %v716_v24  ;;  %1502 = vmatprep.subr.msk.mxu1 %vm620_vm15, %v1575_v39  ;;  %v1234_v24 = vld [vmem:[%s1686_s10 + $0x18] sm:$0xff] }
 0x128   : > { %1503 = vmatpush1.msk.msra.mxu1 %vm619_vm9, %v1575_v39  ;;  %1176 = vmatprep.mubr.f32.mxu1 %v1572_v0 }
 0x129   : > { %1504 = vmatprep.subr.msk.mxu1 %vm618_vm1, %v1575_v39 }
 0x12a   : > { %1505 = vmatpush1.msk.msra.mxu1 %vm617_vm10, %v1575_v39 }
 0x12b   : > { %1506 = vmatprep.subr.msk.mxu1 %vm616_vm4, %v1575_v39 }
 0x12c   : > { %1507 = vmatpush1.msk.msra.mxu1 %vm615_vm13, %v1575_v39 }
 0x12d   : > { %1508 = vmatprep.subr.msk.mxu1 %vm614_vm3, %v1575_v39 }
 0x12e   : > { %1509 = vmatpush1.msk.msra.mxu1 %vm613_vm11, %v1575_v39 }
 0x12f   : > { %1178 = vmatmul.mubr.f32.vlgmr.msra.gmra.mxu1 %v1723_v11 }
 0x199   : > { %v1237_v51 = vpop.xlane.xlu1 %1236 }
 0x19a   : > { %v1247_v18 = vadd.f32 %v1237_v51, %v1231_v50 }
 0x19c   : > { %1252 = vst.msk [vmem:[%s1686_s10] sm:$0xff] %vm400_vm2, %v1247_v18 }
 0x19d   : > { %v1246_v49 = vpop.xlane.xlu1 %1245 }
 0x19e   : > { %v1250_v27 = vadd.f32 %v1246_v49, %v1234_v24 }
 0x1a0   : > { %1255 = vst.msk [vmem:[%s1686_s10 + $0x18] sm:$0xff] %vm400_vm2, %v1250_v27 }
 0x1d5   : > { %v720_v28 = vpop.f32.mrf.mxu1 }
 0x1d7   : > { %v722_v29 = vpop.f32.mrf.mxu1 }
 0x1d9   : > { %v921_v32 = vpop.f32.mrf.mxu0 }
 0x1db   : > { %v923_v23 = vpop.f32.mrf.mxu0 }
 0x1df   : > { %v832_v30 = vpop.f32.mrf.mxu1 }
 0x1e0   : > { %v833_v33 = vadd.f32 %v832_v30, %v720_v28 }
 0x1e1   : > { %v834_v31 = vpop.f32.mrf.mxu1 }
 0x1e2   : > { %v835_v44 = vadd.f32 %v834_v31, %v722_v29  ;;  %v922_v34 = vadd.f32 %v921_v32, %v833_v33 }
 0x1e4   : > { %v1099_v36 = vpop.f32.mrf.mxu0  ;;  %v924_v37 = vadd.f32 %v923_v23, %v835_v44 }
 0x1e6   : > { %v1101_v40 = vpop.f32.mrf.mxu0 }
 0x1e7   : > { %v1003_v11 = vpop.f32.mrf.mxu1 }
 0x1e8   : > { %v1004_v38 = vadd.f32 %v1003_v11, %v922_v34 }
 0x1e9   : > { %v1005_v35 = vpop.f32.mrf.mxu1 }
 0x1ea   : > { %v1006_v39 = vadd.f32 %v1005_v35, %v924_v37  ;;  %v1100_v41 = vadd.f32 %v1099_v36, %v1004_v38 }
 0x1ec   : > { %v1102_v43 = vadd.f32 %v1101_v40, %v1006_v39 }
 0x1ef   : > { %v1179_v42 = vpop.f32.mrf.mxu1 }
 0x1f0   : > { %v1180_v45 = vadd.f32 %v1179_v42, %v1100_v41 }
 0x1f1   : > { %v1181_v46 = vpop.f32.mrf.mxu1 }
 0x1f2   : > { %v1210_v47 = vsub.f32 %v1180_v45, %v1656_v6  ;;  %v1182_v48 = vadd.f32 %v1181_v46, %v1102_v43 }
 0x1f4   : > { %v1213_v52 = vmul.f32 %v1210_v47, %v1210_v47  ;;  %v1186_v53 = vcombine.low %v1180_v45, %v1182_v48  ;;  %v1211_v54 = vsub.f32 %v1182_v48, %v1660_v7 }
 0x1f6   : > { %1188 = vst [vmem:[%s368_s19] sm:$0xff] %v1186_v53  ;;  %v1214_v55 = vmul.f32 %v1211_v54, %v1211_v54  ;;  %v1215_v56 = vsel %vm450_vm0, %v1213_v52, 0.0 }
 0x1f8   : > { %v1216_v57 = vsel %vm450_vm0, %v1214_v55, 0.0 }
 0x1f9   : > { %v1217_v6 = vadd.f32 %v1216_v57, %v1215_v56 }
 0x1fb   : > { %1218 = vadd.xlane.f32.xlu0 %v1217_v6 }
 0x1ff   : > { %1239 = vadd.xlane.f32.xlu0 %v1853_v12 }
 0x203   : > { %1242 = vadd.xlane.f32.xlu0 %v1858_v15 }
 0x284   : > { %v1219_v7 = vpop.xlane.xlu0 %1218 }
 0x285   : > { %v1220_v58 = vrot.slane %v1219_v7, 4 }
 0x287   : > { %v1221_v60 = vadd.f32 %v1220_v58, %v1219_v7 }
 0x288   : > { %v1240_v61 = vpop.xlane.xlu0 %1239 }
 0x289   : > { %v1222_v62 = vrot.slane %v1221_v60, 2  ;;  %v1248_v63 = vadd.f32 %v1240_v61, %v1232_v59 }
 0x28b   : > { %1253 = vst.msk [vmem:[%s1686_s10 + $0x8] sm:$0xff] %vm400_vm2, %v1248_v63  ;;  %v1223_v2 = vadd.f32 %v1222_v62, %v1221_v60 }
 0x28c   : > { %v1243_v3 = vpop.xlane.xlu0 %1242 }
 0x28d   : > { %v1249_v4 = vadd.f32 %v1243_v3, %v1233_v1  ;;  %v1224_v5 = vrot.slane %v1223_v2, 1 }
 0x28f   : > { %1254 = vst.msk [vmem:[%s1686_s10 + $0x10] sm:$0xff] %vm400_vm2, %v1249_v4  ;;  %v1225_v8 = vadd.f32 %v1224_v5, %v1223_v2 }
 0x291   : > { %1515 = vpush %v1225_v8 }
 0x2c2   : > { %s1516_s24 = spop %1515 }
 0x2c3   : > { %v1227_v0 = vstv %s1516_s24 }
 0x2c4   : > { %v1228_v10 = vadd.f32 %v1227_v0, %v1212_v9 }
 0x2c6   : > { %1230 = vst.msk [vmem:[%s385_s21] sm:$0x1] %vm398_vm5, %v1228_v10 }
 0x2c7 PF: > { %s18_s26 = sadd.s32 1, %s1570_s26   ;;  %s1987_s24 = smov %s1566_s25 }
 0x2c8   : > { %p15_p5 = scmp.ge.s32.totalorder %s18_s26, 4   ;;  %s1988_s25 = smov %s1990_s27 }
 0x2ca   :  { %17 = sbr.rel (!%p15_p5) target bundleno = 2 (0x2), region = 106 }

</bundles_post_ra>
